<compile_context>
chip_gen: v5e
topology: v5e:2x2
jax: 0.10.0
libtpu: 0.0.40
codegen_flags: <defaults>
</compile_context>

<pallas_src>
import jax
import jax.numpy as jnp
from jax.experimental import pallas as pl
from jax.experimental.pallas import tpu as pltpu


def _round_up(x, m):
    return ((x + m - 1) // m) * m


# ---------------------------------------------------------------------------
# Kernels
# ---------------------------------------------------------------------------
def _lora_q_merged_kernel(x_ref, wm_ref, bq_ref, o_ref):
    # out = x @ (Wq + Wa @ Wb) + bq   — one MXU matmul per row tile,
    # accumulated in f32, single live (tm, C) temporary.
    acc = jnp.dot(x_ref[...], wm_ref[...], preferred_element_type=jnp.float32)
    acc += bq_ref[...]
    o_ref[...] = acc.astype(o_ref.dtype)


def _lora_q_fused_kernel(x_ref, wq_ref, bq_ref, wa_ref, wb_ref, o_ref):
    # out = x @ Wq + bq + (x @ Wa) @ Wb, accumulated into one (tm, C) value.
    x = x_ref[...]
    acc = jnp.dot(x, wq_ref[...], preferred_element_type=jnp.float32)
    acc += bq_ref[...]
    a = jnp.dot(x, wa_ref[...], preferred_element_type=jnp.float32)   # (tm, r)
    acc += jnp.dot(a.astype(wb_ref.dtype), wb_ref[...],
                   preferred_element_type=jnp.float32)
    o_ref[...] = acc.astype(o_ref.dtype)


# ---------------------------------------------------------------------------
# Wrapper
# ---------------------------------------------------------------------------
def lora_cross_q(x, wq, bq, wa, wb, *, tm=512, merge_lora=True,
                 compute_dtype=None, out_dtype=None):
    """x: [B, N, N, C]; wq: [C, C]; bq: [C]; wa: [C, r]; wb: [r, C].

    Weights are pre-transposed for right-multiplication (y = x @ W).
    """
    B, N1, N2, C = x.shape
    M = B * N1 * N2
    r = wa.shape[1]
    cdt = jnp.dtype(compute_dtype) if compute_dtype is not None else x.dtype
    odt = jnp.dtype(out_dtype) if out_dtype is not None else x.dtype

    # Row tile: as large as possible (amortizes ~0.35us/step and feeds the
    # MXU full-height tiles), clamped for tiny problems, with M padded up to
    # a tile multiple so arbitrary token counts work.
    tm_eff = min(int(tm), _round_up(M, 8))
    Mp = _round_up(M, tm_eff)
    grid = (Mp // tm_eff,)

    x2d = x.reshape(M, C).astype(cdt)
    if Mp != M:
        x2d = jnp.pad(x2d, ((0, Mp - M), (0, 0)))

    bq2d = bq.reshape(1, C).astype(jnp.float32)   # added to the f32 accumulator

    x_bytes = jnp.dtype(cdt).itemsize
    o_bytes = jnp.dtype(odt).itemsize
    w_bytes = jnp.dtype(cdt).itemsize

    # Large resident weights (constant index_map) don't need double buffering;
    # single-buffer them so big-C configs fit v7x's 64 MiB VMEM.
    big_w = C * C * w_bytes >= (8 << 20)
    w_pipe = {"pipeline_mode": pl.Buffered(1)} if big_w else {}

    if merge_lora:
        # Exact for the forward pass: x@Wq + (x@Wa)@Wb == x@(Wq + Wa@Wb).
        wm = (wq.astype(jnp.float32)
              + jnp.dot(wa.astype(jnp.float32), wb.astype(jnp.float32))
              ).astype(cdt)
        in_specs = [
            pl.BlockSpec((tm_eff, C), lambda i: (i, 0)),          # x tile
            pl.BlockSpec((C, C), lambda i: (0, 0), **w_pipe),     # merged W
            pl.BlockSpec((1, C), lambda i: (0, 0)),               # bias
        ]
        operands = (x2d, wm, bq2d)
        kernel = _lora_q_merged_kernel
        flops = 2 * Mp * C * C
        weight_bytes = C * C * w_bytes
    else:
        wq_c = wq.astype(cdt)
        wa_c = wa.astype(cdt)
        wb_c = wb.astype(cdt)
        in_specs = [
            pl.BlockSpec((tm_eff, C), lambda i: (i, 0)),          # x tile
            pl.BlockSpec((C, C), lambda i: (0, 0), **w_pipe),     # Wq
            pl.BlockSpec((1, C), lambda i: (0, 0)),               # bias
            pl.BlockSpec((C, r), lambda i: (0, 0)),               # Wa (down)
            pl.BlockSpec((r, C), lambda i: (0, 0)),               # Wb (up)
        ]
        operands = (x2d, wq_c, bq2d, wa_c, wb_c)
        kernel = _lora_q_fused_kernel
        flops = 2 * Mp * C * C + 4 * Mp * C * r
        weight_bytes = (C * C + 2 * C * r) * w_bytes

    # VMEM budget from actual tile sizes (x + out double buffers, weights,
    # bias), with headroom; capped at v7x physical VMEM.
    w_bufs = 1 if big_w else 2
    vmem_needed = (2 * tm_eff * C * (x_bytes + o_bytes)
                   + w_bufs * weight_bytes + 2 * C * 4)
    vmem_limit = int(min(max(2 * vmem_needed, 16 << 20), 64 << 20))

    bytes_accessed = (Mp * C * x_bytes + weight_bytes + C * 4
                      + Mp * C * o_bytes)

    out2d = pl.pallas_call(
        kernel,
        out_shape=jax.ShapeDtypeStruct((Mp, C), odt),
        grid_spec=pltpu.PrefetchScalarGridSpec(
            num_scalar_prefetch=0,
            grid=grid,
            in_specs=in_specs,
            out_specs=pl.BlockSpec((tm_eff, C), lambda i: (i, 0)),
        ),
        compiler_params=pltpu.CompilerParams(
            dimension_semantics=("parallel",),
            vmem_limit_bytes=vmem_limit),
        cost_estimate=pl.CostEstimate(
            flops=flops, transcendentals=0, bytes_accessed=bytes_accessed),
    )(*operands)

    if Mp != M:
        out2d = out2d[:M]
    return out2d.reshape(B, N1, N2, C)


# ---------------------------------------------------------------------------
# Reference + self-test
# ---------------------------------------------------------------------------
def _reference(x, wq, bq, wa, wb):
    q = jnp.einsum("bhwc,cd->bhwd", x, wq) + bq
    new_q = jnp.einsum("bhwr,rd->bhwd",
                       jnp.einsum("bhwc,cr->bhwr", x, wa), wb)
    return q + new_q


if __name__ == "__main__":
    # Small shapes consistent with the module's forward: x [B, N, N, C]
    B, N, C, r = 2, 8, 32, 4
    key = jax.random.PRNGKey(0)
    kx, kwq, kbq, kwa, kwb = jax.random.split(key, 5)

    x = jax.random.normal(kx, (B, N, N, C), dtype=jnp.float32)
    # Synthetic params (q_lin: C->C with bias; LoRA a: C->r; LoRA b: r->C).
    # LoRA B is conventionally zero-init; use nonzero so the path is exercised.
    wq = jax.random.normal(kwq, (C, C), dtype=jnp.float32) * (1.0 / C ** 0.5)
    bq = jax.random.normal(kbq, (C,), dtype=jnp.float32) * 0.01
    wa = jax.random.normal(kwa, (C, r), dtype=jnp.float32) * (1.0 / C ** 0.5)
    wb = jax.random.normal(kwb, (r, C), dtype=jnp.float32) * (1.0 / r ** 0.5)

    ref = _reference(x, wq, bq, wa, wb)

    # 1) f32, merged-weight fast path (default).
    out = jax.block_until_ready(lora_cross_q(x, wq, bq, wa, wb))
    assert out.shape == (B, N, N, C)
    assert jnp.allclose(out, ref, atol=1e-4, rtol=1e-4), "merged f32 mismatch"

    # 2) f32, unmerged three-matmul path (for callers whose weights change).
    out_u = jax.block_until_ready(
        lora_cross_q(x, wq, bq, wa, wb, merge_lora=False))
    assert jnp.allclose(out_u, ref, atol=1e-4, rtol=1e-4), "fused f32 mismatch"

    # 3) bf16 compute path (halves HBM traffic); f32 accumulation, loose tol.
    out_bf = jax.block_until_ready(
        lora_cross_q(x, wq, bq, wa, wb, compute_dtype=jnp.bfloat16))
    rel = jnp.max(jnp.abs(out_bf - ref)) / jnp.max(jnp.abs(ref))
    assert rel < 5e-2, f"bf16 path relative error too large: {rel}"

    # 4) Token count not divisible by the tile (exercises pad + slice path).
    x_odd = jax.random.normal(kx, (1, 5, 5, C), dtype=jnp.float32)
    out_odd = jax.block_until_ready(lora_cross_q(x_odd, wq, bq, wa, wb))
    assert jnp.allclose(out_odd, _reference(x_odd, wq, bq, wa, wb),
                        atol=1e-4, rtol=1e-4), "padded-M mismatch"

    print("KERNEL_OK")
</pallas_src>

<mosaic_0001>
module attributes {stable_mosaic.version = 11 : i64} {
  func.func @_lora_q_merged_kernel(%arg0: i32, %arg1: memref<128x32xf32, #tpu.memory_space<vmem>>, %arg2: memref<32x32xf32, #tpu.memory_space<vmem>>, %arg3: memref<1x32xf32, #tpu.memory_space<vmem>>, %arg4: memref<128x32xf32, #tpu.memory_space<vmem>>) attributes {dimension_semantics = [#tpu.dimension_semantics<parallel>], iteration_bounds = array<i64: 1>, scalar_prefetch = 0 : i64, scratch_operands = 0 : i64, tpu.core_type = #tpu.core_type<tc>, window_params = [{transform_indices = @transform_0, window_bounds = array<i64: 128, 32>}, {pipeline_mode = #tpu.pipeline_mode<synchronous>, transform_indices = @transform_1, window_bounds = array<i64: 32, 32>}, {pipeline_mode = #tpu.pipeline_mode<synchronous>, transform_indices = @transform_2, window_bounds = array<i64: 1, 32>}, {transform_indices = @transform_3, window_bounds = array<i64: 128, 32>}]} {
    %c0 = arith.constant 0 : index
    %c0_0 = arith.constant 0 : index
    %0 = vector.load %arg1[%c0, %c0_0] : memref<128x32xf32, #tpu.memory_space<vmem>>, vector<128x32xf32>
    %c0_1 = arith.constant 0 : index
    %c0_2 = arith.constant 0 : index
    %1 = vector.load %arg2[%c0_1, %c0_2] : memref<32x32xf32, #tpu.memory_space<vmem>>, vector<32x32xf32>
    %cst = arith.constant dense<0.000000e+00> : vector<128x32xf32>
    %2 = tpu.matmul %0, %1, %cst {dimension_numbers = #tpu.dot_dimension_numbers<[1], [0], [0], [1], [0, 0, 1, 1], [], []>} : vector<128x32xf32>, vector<32x32xf32>, vector<128x32xf32> -> vector<128x32xf32>
    %c0_3 = arith.constant 0 : index
    %c0_4 = arith.constant 0 : index
    %3 = vector.load %arg3[%c0_3, %c0_4] : memref<1x32xf32, #tpu.memory_space<vmem>>, vector<1x32xf32>
    %4 = vector.broadcast %3 : vector<1x32xf32> to vector<128x32xf32>
    %5 = arith.addf %2, %4 : vector<128x32xf32>
    %c0_5 = arith.constant 0 : index
    %c0_6 = arith.constant 0 : index
    %6 = vector.load %arg4[%c0_5, %c0_6] : memref<128x32xf32, #tpu.memory_space<vmem>>, vector<128x32xf32>
    tpu.vector_store %arg4[%c0_5, %c0_6], %5 {strides = array<i32>} : memref<128x32xf32, #tpu.memory_space<vmem>>, vector<128x32xf32>,
    return
  }
  func.func @transform_0(%arg0: i32) -> (i32, i32) {
    %c0_i32 = arith.constant 0 : i32
    %c0_i32_0 = arith.constant 0 : i32
    return %arg0, %c0_i32 : i32, i32
  }
  func.func @transform_1(%arg0: i32) -> (i32, i32) {
    %c0_i32 = arith.constant 0 : i32
    %c0_i32_0 = arith.constant 0 : i32
    %c0_i32_1 = arith.constant 0 : i32
    return %c0_i32, %c0_i32_0 : i32, i32
  }
  func.func @transform_2(%arg0: i32) -> (i32, i32) {
    %c0_i32 = arith.constant 0 : i32
    %c0_i32_0 = arith.constant 0 : i32
    %c0_i32_1 = arith.constant 0 : i32
    return %c0_i32, %c0_i32_0 : i32, i32
  }
  func.func @transform_3(%arg0: i32) -> (i32, i32) {
    %c0_i32 = arith.constant 0 : i32
    %c0_i32_0 = arith.constant 0 : i32
    return %arg0, %c0_i32 : i32, i32
  }
}

</mosaic_0001>

<bundles_post_ra>
// kernel: tpu_custom_call.1
= control target key start
LH: loop header
LB: loop body
LE: loop exit
PB: predicated region body
PF: predicated region fallthrough
CT: control target
= control target key end

     0   :  { %vm38_vm0 = vcmask 261120   ;;  %s364_s1 = inlined_call_operand.vmem [shape: f32[32,32], index: 1, kind: input, shape index: {}]   ;;  %s365_s0 = inlined_call_operand.vmem [shape: f32[128,32], index: 0, kind: input, shape index: {}]   ;;  %s366_s2 = inlined_call_operand.vmem [shape: f32[1,32], index: 2, kind: input, shape index: {}]   ;;  %s367_s3 = inlined_call_operand.vmem [shape: f32[128,32], index: 3, kind: output, shape index: {}]  }
   0x1   :  { %v33_v0 = vld [vmem:[%s364_s1 + $0x18] sm:$0xff]  ;;  %v32_v1 = vld [vmem:[%s364_s1 + $0x10] sm:$0xff]  ;;  %v31_v2 = vld [vmem:[%s364_s1 + $0x8] sm:$0xff] }
   0x2   :  { %189 = vmatpush.msra.mxu2 %v33_v0  ;;  %190 = vmatpush.msra.mxu3 %v33_v0  ;;  %v30_v3 = vld [vmem:[%s364_s1] sm:$0xff]  ;;  %v23_v8 = vld [vmem:[%s365_s0 + $0x48] sm:$0xff]  ;;  %v24_v12 = vld [vmem:[%s365_s0 + $0x50] sm:$0xff] }
   0x3   :  { %99 = vmatpush.msra.mxu0 %v33_v0  ;;  %188 = vmatpush.msra.mxu1 %v33_v0  ;;  %v22_v4 = vld [vmem:[%s365_s0 + $0x40] sm:$0xff]  ;;  %v27_v9 = vld [vmem:[%s365_s0 + $0x68] sm:$0xff]  ;;  %v28_v13 = vld [vmem:[%s365_s0 + $0x70] sm:$0xff] }
   0x4   :  { %192 = vmatpush.msra.mxu2 %v32_v1  ;;  %193 = vmatpush.msra.mxu3 %v32_v1  ;;  %v26_v5 = vld [vmem:[%s365_s0 + $0x60] sm:$0xff]  ;;  %v15_v10 = vld [vmem:[%s365_s0 + $0x8] sm:$0xff]  ;;  %v16_v14 = vld [vmem:[%s365_s0 + $0x10] sm:$0xff] }
   0x5   :  { %100 = vmatpush.msra.mxu0 %v32_v1  ;;  %191 = vmatpush.msra.mxu1 %v32_v1  ;;  %v14_v6 = vld [vmem:[%s365_s0] sm:$0xff]  ;;  %v19_v11 = vld [vmem:[%s365_s0 + $0x28] sm:$0xff]  ;;  %v20_v15 = vld [vmem:[%s365_s0 + $0x30] sm:$0xff] }
   0x6   :  { %195 = vmatpush.msra.mxu2 %v31_v2  ;;  %196 = vmatpush.msra.mxu3 %v31_v2  ;;  %v18_v7 = vld [vmem:[%s365_s0 + $0x20] sm:$0xff]  ;;  %v25_v16 = vld [vmem:[%s365_s0 + $0x58] sm:$0xff] }
   0x7   :  { %101 = vmatpush.msra.mxu0 %v31_v2  ;;  %194 = vmatpush.msra.mxu1 %v31_v2  ;;  %v29_v17 = vld [vmem:[%s365_s0 + $0x78] sm:$0xff]  ;;  %v200_v20 = vld [vmem:[%s366_s2] ss:$0 sm:$0xff] }
   0x8   :  { %198 = vmatpush.msra.mxu2 %v30_v3  ;;  %199 = vmatpush.msra.mxu3 %v30_v3  ;;  %v17_v18 = vld [vmem:[%s365_s0 + $0x18] sm:$0xff] }
   0x9   :  { %180 = vmatmul.msk.f32.vlgmr.msra.gmra.mxu2 %vm38_vm0, %v22_v4  ;;  %184 = vmatmul.msk.f32.vlgmr.msra.gmra.mxu3 %vm38_vm0, %v26_v5  ;;  %v21_v19 = vld [vmem:[%s365_s0 + $0x38] sm:$0xff] }
   0xa   :  { %102 = vmatpush.msra.mxu0 %v30_v3  ;;  %197 = vmatpush.msra.mxu1 %v30_v3 }
   0xb   :  { %172 = vmatmul.msk.f32.vlgmr.msra.gmra.mxu0 %vm38_vm0, %v14_v6  ;;  %176 = vmatmul.msk.f32.vlgmr.msra.gmra.mxu1 %vm38_vm0, %v18_v7 }
  0x11   :  { %181 = vmatmul.msk.f32.gmra.mxu2 %vm38_vm0, %v23_v8  ;;  %185 = vmatmul.msk.f32.gmra.mxu3 %vm38_vm0, %v27_v9 }
  0x13   :  { %173 = vmatmul.msk.f32.gmra.mxu0 %vm38_vm0, %v15_v10  ;;  %177 = vmatmul.msk.f32.gmra.mxu1 %vm38_vm0, %v19_v11 }
  0x19   :  { %182 = vmatmul.msk.f32.gmra.mxu2 %vm38_vm0, %v24_v12  ;;  %186 = vmatmul.msk.f32.gmra.mxu3 %vm38_vm0, %v28_v13 }
  0x1b   :  { %174 = vmatmul.msk.f32.gmra.mxu0 %vm38_vm0, %v16_v14  ;;  %178 = vmatmul.msk.f32.gmra.mxu1 %vm38_vm0, %v20_v15 }
  0x21   :  { %183 = vmatmul.msk.f32.gmra.mxu2 %vm38_vm0, %v25_v16  ;;  %187 = vmatmul.msk.f32.gmra.mxu3 %vm38_vm0, %v29_v17 }
  0x23   :  { %175 = vmatmul.msk.f32.gmra.mxu0 %vm38_vm0, %v17_v18  ;;  %179 = vmatmul.msk.f32.gmra.mxu1 %vm38_vm0, %v21_v19 }
  0x88   :  { %v104_v21 = vpop.f32.mrf.mxu0  ;;  %v116_v22 = vpop.f32.mrf.mxu1 }
  0x89   :  { %v105_v23 = vadd.f32 %v200_v20, %v104_v21  ;;  %v117_v24 = vadd.f32 %v200_v20, %v116_v22 }
  0x8b   :  { %152 = vst.msk [vmem:[%s367_s3] sm:$0xff] %vm38_vm0, %v105_v23 }
  0x8c   :  { %156 = vst.msk [vmem:[%s367_s3 + $0x20] sm:$0xff] %vm38_vm0, %v117_v24  ;;  %v128_v25 = vpop.f32.mrf.mxu2  ;;  %v140_v26 = vpop.f32.mrf.mxu3 }
  0x8d   :  { %v129_v27 = vadd.f32 %v200_v20, %v128_v25  ;;  %v141_v28 = vadd.f32 %v200_v20, %v140_v26 }
  0x8f   :  { %160 = vst.msk [vmem:[%s367_s3 + $0x40] sm:$0xff] %vm38_vm0, %v129_v27 }
  0x90   :  { %164 = vst.msk [vmem:[%s367_s3 + $0x60] sm:$0xff] %vm38_vm0, %v141_v28  ;;  %v107_v29 = vpop.f32.mrf.mxu0  ;;  %v119_v30 = vpop.f32.mrf.mxu1 }
  0x91   :  { %v108_v31 = vadd.f32 %v200_v20, %v107_v29  ;;  %v120_v32 = vadd.f32 %v200_v20, %v119_v30 }
  0x93   :  { %153 = vst.msk [vmem:[%s367_s3 + $0x8] sm:$0xff] %vm38_vm0, %v108_v31 }
  0x94   :  { %157 = vst.msk [vmem:[%s367_s3 + $0x28] sm:$0xff] %vm38_vm0, %v120_v32  ;;  %v131_v33 = vpop.f32.mrf.mxu2  ;;  %v143_v34 = vpop.f32.mrf.mxu3 }
  0x95   :  { %v132_v35 = vadd.f32 %v200_v20, %v131_v33  ;;  %v144_v36 = vadd.f32 %v200_v20, %v143_v34 }
  0x97   :  { %161 = vst.msk [vmem:[%s367_s3 + $0x48] sm:$0xff] %vm38_vm0, %v132_v35 }
  0x98   :  { %165 = vst.msk [vmem:[%s367_s3 + $0x68] sm:$0xff] %vm38_vm0, %v144_v36  ;;  %v110_v37 = vpop.f32.mrf.mxu0  ;;  %v122_v38 = vpop.f32.mrf.mxu1 }
  0x99   :  { %v111_v39 = vadd.f32 %v200_v20, %v110_v37  ;;  %v123_v40 = vadd.f32 %v200_v20, %v122_v38 }
  0x9b   :  { %154 = vst.msk [vmem:[%s367_s3 + $0x10] sm:$0xff] %vm38_vm0, %v111_v39 }
  0x9c   :  { %158 = vst.msk [vmem:[%s367_s3 + $0x30] sm:$0xff] %vm38_vm0, %v123_v40  ;;  %v134_v41 = vpop.f32.mrf.mxu2  ;;  %v146_v42 = vpop.f32.mrf.mxu3 }
  0x9d   :  { %v135_v43 = vadd.f32 %v200_v20, %v134_v41  ;;  %v147_v44 = vadd.f32 %v200_v20, %v146_v42 }
  0x9f   :  { %162 = vst.msk [vmem:[%s367_s3 + $0x50] sm:$0xff] %vm38_vm0, %v135_v43 }
  0xa0   :  { %166 = vst.msk [vmem:[%s367_s3 + $0x70] sm:$0xff] %vm38_vm0, %v147_v44  ;;  %v113_v45 = vpop.f32.mrf.mxu0  ;;  %v125_v46 = vpop.f32.mrf.mxu1 }
  0xa1   :  { %v114_v47 = vadd.f32 %v200_v20, %v113_v45  ;;  %v126_v48 = vadd.f32 %v200_v20, %v125_v46 }
  0xa3   :  { %155 = vst.msk [vmem:[%s367_s3 + $0x18] sm:$0xff] %vm38_vm0, %v114_v47 }
  0xa4   :  { %159 = vst.msk [vmem:[%s367_s3 + $0x38] sm:$0xff] %vm38_vm0, %v126_v48  ;;  %v137_v49 = vpop.f32.mrf.mxu2  ;;  %v149_v50 = vpop.f32.mrf.mxu3 }
  0xa5   :  { %v138_v51 = vadd.f32 %v200_v20, %v137_v49  ;;  %v150_v52 = vadd.f32 %v200_v20, %v149_v50 }
  0xa7   :  { %163 = vst.msk [vmem:[%s367_s3 + $0x58] sm:$0xff] %vm38_vm0, %v138_v51 }
  0xa8   :  { %167 = vst.msk [vmem:[%s367_s3 + $0x78] sm:$0xff] %vm38_vm0, %v150_v52 }

</bundles_post_ra>
